<compile_context>
chip_gen: v6e
topology: v6e:2x2x1
jax: 0.10.0
libtpu: 0.0.40
codegen_flags: <defaults>
</compile_context>

<pallas_src>
import functools

import jax
import jax.numpy as jnp
from jax import lax
from jax.experimental import pallas as pl
from jax.experimental.pallas import tpu as pltpu


def _maxpool_stride1_kernel(x_ref, o_ref, pad_ref, col_ref=None, *,
                            k, s, H, W, O_h, O_w):
    """One (batch, channel-block) tile, NHWC layout: (1, H, W, Cb) -> (1, O_h, O_w, Cb).

    Replicate-pads right/bottom by k-1 into a VMEM scratch, then does a separable
    k-wide max (W pass, then H pass) sampled at stride s = k-1.
    """
    P = k - 1
    Cb = x_ref.shape[-1]

    x = x_ref[0]                                              # (H, W, Cb), C on lanes

    # ---- replicate pad into scratch (border writes only; no concatenates) ----
    pad_ref[:H, :W, :] = x
    pad_ref[H:, :W, :] = jnp.broadcast_to(x[H - 1:H, :, :], (P, W, Cb))
    pad_ref[:H, W:, :] = jnp.broadcast_to(x[:, W - 1:W, :], (H, P, Cb))
    pad_ref[H:, W:, :] = jnp.broadcast_to(x[H - 1:H, W - 1:W, :], (P, P, Cb))

    if s == 1:
        # Canonical k=2 path: everything is contiguous shifted maxima.
        # Pass 1 (along W): colmax[r, j] = max_{dj<k} pad[r, j + dj]
        colmax = pad_ref[:, 0:O_w, :]                         # (H+P, O_w, Cb)
        for dj in range(1, k):
            colmax = jnp.maximum(colmax, pad_ref[:, dj:dj + O_w, :])
        # Pass 2 (along H): out[i, j] = max_{di<k} colmax[i + di, j]
        acc = colmax[0:O_h, :, :]
        for di in range(1, k):
            acc = jnp.maximum(acc, colmax[di:di + O_h, :, :])
    else:
        # General k: sample output positions with strided reads from VMEM scratch.
        colmax = pad_ref[:, pl.ds(0, O_w, s), :]              # (H+P, O_w, Cb)
        for dj in range(1, k):
            colmax = jnp.maximum(colmax, pad_ref[:, pl.ds(dj, O_w, s), :])
        col_ref[...] = colmax
        acc = col_ref[pl.ds(0, O_h, s), :, :]
        for di in range(1, k):
            acc = jnp.maximum(acc, col_ref[pl.ds(di, O_h, s), :, :])

    o_ref[0] = acc.astype(o_ref.dtype)


def _choose_channel_block(N, C, H, W, O_h, O_w, pad, strided, itemsize,
                          budget_bytes=20 * 1024 * 1024):
    """Channel block: multiple of 128 (or full C), fits VMEM budget (double-buffered
    in/out blocks + scratch), and keeps >=2 grid steps for v7x's 2 TCs when batch=1."""
    if C % 128 != 0:
        return C  # must equal the full channel dim to satisfy the lane-tiling rule
    per_c = 2 * H * W + 2 * O_h * O_w + (H + pad) * (W + pad)
    if strided:
        per_c += (H + pad) * O_w
    per_c *= itemsize
    cap = max(128, (int(budget_bytes // per_c) // 128) * 128)
    if N < 2 and C % 256 == 0:
        cap = min(cap, C // 2)          # leave >=2 parallel steps for two TensorCores
    cb = min(C, cap)
    while C % cb:
        cb -= 128
    return cb


def maxpool_stride1(x, kernel_size):
    """Pallas implementation of MaxPool_stride1.forward for an NCHW input."""
    k = int(kernel_size)
    assert k >= 2, "MaxPool2d(kernel, stride=kernel-1) requires kernel_size >= 2"
    s = k - 1
    P = k - 1
    N, C, H, W = x.shape
    O_h = (H - 1) // s + 1
    O_w = (W - 1) // s + 1

    # NHWC so channels sit on the lane axis (dense vregs, unmasked lane-dense stores).
    # TODO(synk): in a full network, keep activations NHWC end-to-end so these two
    # layout transposes disappear.
    x_nhwc = jnp.transpose(x, (0, 2, 3, 1))

    Cb = _choose_channel_block(N, C, H, W, O_h, O_w, P, s > 1, x.dtype.itemsize)
    n_cblk = C // Cb

    kernel = functools.partial(
        _maxpool_stride1_kernel, k=k, s=s, H=H, W=W, O_h=O_h, O_w=O_w)

    scratch_shapes = [pltpu.VMEM((H + P, W + P, Cb), x.dtype)]
    if s > 1:
        scratch_shapes.append(pltpu.VMEM((H + P, O_w, Cb), x.dtype))

    out_nhwc = pl.pallas_call(
        kernel,
        out_shape=jax.ShapeDtypeStruct((N, O_h, O_w, C), x.dtype),
        grid_spec=pltpu.PrefetchScalarGridSpec(
            num_scalar_prefetch=0,
            grid=(N, n_cblk),
            in_specs=[pl.BlockSpec((1, H, W, Cb), lambda n, c: (n, 0, 0, c))],
            out_specs=pl.BlockSpec((1, O_h, O_w, Cb), lambda n, c: (n, 0, 0, c)),
            scratch_shapes=scratch_shapes),
        compiler_params=pltpu.CompilerParams(
            dimension_semantics=("parallel", "parallel"),
            vmem_limit_bytes=48 * 1024 * 1024),
    )(x_nhwc)

    return jnp.transpose(out_nhwc, (0, 3, 1, 2))


if __name__ == "__main__":
    key = jax.random.PRNGKey(0)
    N, C, H, W = 2, 4, 16, 16
    kernel_size = 2  # standard YOLOv3 MaxPool_stride1 usage

    x = jax.random.normal(key, (N, C, H, W), dtype=jnp.float32)

    out = maxpool_stride1(x, kernel_size)
    out = jax.block_until_ready(out)

    # Pure-JAX reference of the exact PyTorch semantics (replicate pad + MaxPool2d(k, k-1)).
    k, s = kernel_size, kernel_size - 1
    x_pad = jnp.pad(x, ((0, 0), (0, 0), (0, k - 1), (0, k - 1)), mode="edge")
    ref = lax.reduce_window(
        x_pad, -jnp.inf, lax.max,
        window_dimensions=(1, 1, k, k),
        window_strides=(1, 1, s, s),
        padding="VALID",
    )

    assert out.shape == ref.shape, (out.shape, ref.shape)
    assert out.dtype == x.dtype
    assert jnp.allclose(out, ref), "Pallas result mismatch vs reference"
    print("KERNEL_OK")
</pallas_src>

<mosaic_0001>
module attributes {stable_mosaic.version = 11 : i64} {
  func.func @_maxpool_stride1_kernel(%arg0: i32, %arg1: i32, %arg2: memref<1x16x16x4xf32, #tpu.memory_space<vmem>>, %arg3: memref<1x16x16x4xf32, #tpu.memory_space<vmem>>, %arg4: memref<17x17x4xf32, #tpu.memory_space<vmem>>) attributes {dimension_semantics = [#tpu.dimension_semantics<parallel>, #tpu.dimension_semantics<parallel>], iteration_bounds = array<i64: 2, 1>, scalar_prefetch = 0 : i64, scratch_operands = 1 : i64, tpu.core_type = #tpu.core_type<tc>, window_params = [{transform_indices = @transform_0, window_bounds = array<i64: 1, 16, 16, 4>}, {transform_indices = @transform_1, window_bounds = array<i64: 1, 16, 16, 4>}]} {
    %c0 = arith.constant 0 : index
    %c0_0 = arith.constant 0 : index
    %c0_1 = arith.constant 0 : index
    %c0_2 = arith.constant 0 : index
    %0 = vector.load %arg2[%c0, %c0_0, %c0_1, %c0_2] : memref<1x16x16x4xf32, #tpu.memory_space<vmem>>, vector<1x16x16x4xf32>
    %1 = vector.shape_cast %0 : vector<1x16x16x4xf32> to vector<16x16x4xf32>
    %c0_3 = arith.constant 0 : index
    %c0_4 = arith.constant 0 : index
    %c0_5 = arith.constant 0 : index
    %2 = vector.load %arg4[%c0_3, %c0_4, %c0_5] : memref<17x17x4xf32, #tpu.memory_space<vmem>>, vector<16x16x4xf32>
    tpu.vector_store %arg4[%c0_3, %c0_4, %c0_5], %1 {strides = array<i32>} : memref<17x17x4xf32, #tpu.memory_space<vmem>>, vector<16x16x4xf32>,
    %3 = vector.extract_strided_slice %1 {offsets = [15, 0, 0], sizes = [1, 16, 4], strides = [1, 1, 1]} : vector<16x16x4xf32> to vector<1x16x4xf32>
    %c16 = arith.constant 16 : index
    %c0_6 = arith.constant 0 : index
    %c0_7 = arith.constant 0 : index
    %4 = vector.load %arg4[%c16, %c0_6, %c0_7] : memref<17x17x4xf32, #tpu.memory_space<vmem>>, vector<1x16x4xf32>
    tpu.vector_store %arg4[%c16, %c0_6, %c0_7], %3 {strides = array<i32>} : memref<17x17x4xf32, #tpu.memory_space<vmem>>, vector<1x16x4xf32>,
    %5 = vector.extract_strided_slice %1 {offsets = [0, 15, 0], sizes = [16, 1, 4], strides = [1, 1, 1]} : vector<16x16x4xf32> to vector<16x1x4xf32>
    %c0_8 = arith.constant 0 : index
    %c16_9 = arith.constant 16 : index
    %c0_10 = arith.constant 0 : index
    %6 = vector.load %arg4[%c0_8, %c16_9, %c0_10] : memref<17x17x4xf32, #tpu.memory_space<vmem>>, vector<16x1x4xf32>
    tpu.vector_store %arg4[%c0_8, %c16_9, %c0_10], %5 {strides = array<i32>} : memref<17x17x4xf32, #tpu.memory_space<vmem>>, vector<16x1x4xf32>,
    %7 = vector.extract_strided_slice %1 {offsets = [15, 15, 0], sizes = [1, 1, 4], strides = [1, 1, 1]} : vector<16x16x4xf32> to vector<1x1x4xf32>
    %c16_11 = arith.constant 16 : index
    %c16_12 = arith.constant 16 : index
    %c0_13 = arith.constant 0 : index
    %8 = vector.load %arg4[%c16_11, %c16_12, %c0_13] : memref<17x17x4xf32, #tpu.memory_space<vmem>>, vector<1x1x4xf32>
    tpu.vector_store %arg4[%c16_11, %c16_12, %c0_13], %7 {strides = array<i32>} : memref<17x17x4xf32, #tpu.memory_space<vmem>>, vector<1x1x4xf32>,
    %c0_14 = arith.constant 0 : index
    %c0_15 = arith.constant 0 : index
    %c0_16 = arith.constant 0 : index
    %9 = vector.load %arg4[%c0_14, %c0_15, %c0_16] : memref<17x17x4xf32, #tpu.memory_space<vmem>>, vector<17x16x4xf32>
    %c0_17 = arith.constant 0 : index
    %c1 = arith.constant 1 : index
    %c0_18 = arith.constant 0 : index
    %10 = vector.load %arg4[%c0_17, %c1, %c0_18] : memref<17x17x4xf32, #tpu.memory_space<vmem>>, vector<17x16x4xf32>
    %11 = arith.maximumf %9, %10 : vector<17x16x4xf32>
    %12 = vector.extract_strided_slice %11 {offsets = [0, 0, 0], sizes = [16, 16, 4], strides = [1, 1, 1]} : vector<17x16x4xf32> to vector<16x16x4xf32>
    %13 = vector.extract_strided_slice %11 {offsets = [1, 0, 0], sizes = [16, 16, 4], strides = [1, 1, 1]} : vector<17x16x4xf32> to vector<16x16x4xf32>
    %14 = arith.maximumf %12, %13 : vector<16x16x4xf32>
    %c0_19 = arith.constant 0 : index
    %c0_20 = arith.constant 0 : index
    %c0_21 = arith.constant 0 : index
    %c0_22 = arith.constant 0 : index
    %15 = vector.load %arg3[%c0_19, %c0_20, %c0_21, %c0_22] : memref<1x16x16x4xf32, #tpu.memory_space<vmem>>, vector<1x16x16x4xf32>
    %16 = vector.shape_cast %15 : vector<1x16x16x4xf32> to vector<16x16x4xf32>
    %17 = vector.shape_cast %14 : vector<16x16x4xf32> to vector<1x16x16x4xf32>
    tpu.vector_store %arg3[%c0_19, %c0_20, %c0_21, %c0_22], %17 {strides = array<i32>} : memref<1x16x16x4xf32, #tpu.memory_space<vmem>>, vector<1x16x16x4xf32>,
    return
  }
  func.func @transform_0(%arg0: i32, %arg1: i32) -> (i32, i32, i32, i32) {
    %c0_i32 = arith.constant 0 : i32
    %c0_i32_0 = arith.constant 0 : i32
    %c0_i32_1 = arith.constant 0 : i32
    return %arg0, %c0_i32, %c0_i32_0, %arg1 : i32, i32, i32, i32
  }
  func.func @transform_1(%arg0: i32, %arg1: i32) -> (i32, i32, i32, i32) {
    %c0_i32 = arith.constant 0 : i32
    %c0_i32_0 = arith.constant 0 : i32
    %c0_i32_1 = arith.constant 0 : i32
    return %arg0, %c0_i32, %c0_i32_0, %arg1 : i32, i32, i32, i32
  }
}

</mosaic_0001>

<bundles_post_ra>
// kernel: tpu_custom_call.1
= control target key start
LH: loop header
LB: loop body
LE: loop exit
PB: predicated region body
PF: predicated region fallthrough
CT: control target
= control target key end

     0   :  { %s554_s6 = smov 0   ;;  %s556_s7 = smov 0   ;;  %s745_s0 = inlined_call_operand.vmem [shape: f32[2,16,16,4], index: 0, kind: input, shape index: {}]   ;;  %s746_s1 = inlined_call_operand.vmem [shape: f32[2,16,16,4], index: 1, kind: output, shape index: {}]  }
   0x1   :  { %s558_s8 = smov 0  }
   0x2 LB: > { %s23_s9 = sadd.s32 1, %s538_s7  ;;  %p487_p0 = scmp.ge.s32.totalorder %s542_s8, 1  ;;  %s542_s8 = sphi %s558_s8, %s11_s8   ;;  %s538_s7 = sphi %s556_s7, %s748_s7   ;;  %s534_s6 = sphi %s554_s6, %s747_s6  }
   0x3   : > { %p25_p1 = scmp.ge.s32.totalorder %s23_s9, 2  ;;  %p106_p2 = scmp.lt.s32.totalorder %s542_s8, 3 }
   0x5   : > { %s750_s9 = smov (%p25_p1, %s23_s9), 0  ;;  %p107_p3 = pnand %p487_p0, %p106_p2 }
   0x6   : > { %p132_p4 = scmp.lt.s32.totalorder (!%p107_p3), %s534_s6, 1 }
   0x7   : > { %110 = sbr.rel (%p107_p3) target bundleno = 65 (0x41), region = 24 }
   0xc   : > { %s752_s6 = smov (!%p132_p4, %s534_s6), 1  ;;  %vm180_vm0 = vcmask 31744   ;;  %vm216_vm1 = vcmask 31751  }
   0xd   : > { %s494_s10 = sshll.u32 %s752_s6, 8 }
   0xe   : > { %s580_s13 = scalar_lea.vmem %s745_s0, %s494_s10  ;;  %s670_s16 = scalar_lea.vmem %s746_s1, %s494_s10 }
   0xf   : > { %v148_v0 = vld [vmem:[%s580_s13] sm:$0xff]  ;;  %v149_v1 = vld [vmem:[%s580_s13 + $0x8] sm:$0xff]  ;;  %v150_v2 = vld [vmem:[%s580_s13 + $0x10] sm:$0xff] }
  0x10   : > { %181 = vst.msk [vmem:[#allocation2] sm:$0xff] %vm180_vm0, %v148_v0  ;;  %182 = vst.msk [vmem:[#allocation2 + $0x8] sm:$0xff] %vm180_vm0, %v149_v1  ;;  %v151_v3 = vld [vmem:[%s580_s13 + $0x18] sm:$0xff]  ;;  %v152_v4 = vld [vmem:[%s580_s13 + $0x20] sm:$0xff] }
  0x11   : > { %183 = vst.msk [vmem:[#allocation2 + $0x18] sm:$0xff] %vm180_vm0, %v150_v2  ;;  %v153_v5 = vld [vmem:[%s580_s13 + $0x28] sm:$0xff]  ;;  %184 = vst.msk [vmem:[#allocation2 + $0x20] sm:$0xff] %vm180_vm0, %v151_v3  ;;  %v154_v6 = vld [vmem:[%s580_s13 + $0x30] sm:$0xff] }
  0x12   : > { %217 = vst.msk [vmem:[#allocation2 + $0x9] sm:$0x80] %vm216_vm1, %v149_v1  ;;  %v155_v7 = vld [vmem:[%s580_s13 + $0x38] sm:$0xff]  ;;  %v156_v8 = vld [vmem:[%s580_s13 + $0x40] sm:$0xff]  ;;  %218 = vst.msk [vmem:[#allocation2 + $0x21] sm:$0x80] %vm216_vm1, %v151_v3 }
  0x13   : > { %185 = vst.msk [vmem:[#allocation2 + $0x30] sm:$0xff] %vm180_vm0, %v152_v4  ;;  %186 = vst.msk [vmem:[#allocation2 + $0x38] sm:$0xff] %vm180_vm0, %v153_v5  ;;  %v157_v9 = vld [vmem:[%s580_s13 + $0x48] sm:$0xff]  ;;  %v158_v10 = vld [vmem:[%s580_s13 + $0x50] sm:$0xff] }
  0x14   : > { %219 = vst.msk [vmem:[#allocation2 + $0x39] sm:$0x80] %vm216_vm1, %v153_v5  ;;  %v159_v11 = vld [vmem:[%s580_s13 + $0x58] sm:$0xff]  ;;  %220 = vst.msk [vmem:[#allocation2 + $0x51] sm:$0x80] %vm216_vm1, %v155_v7  ;;  %v160_v12 = vld [vmem:[%s580_s13 + $0x60] sm:$0xff] }
  0x15   : > { %187 = vst.msk [vmem:[#allocation2 + $0x48] sm:$0xff] %vm180_vm0, %v154_v6  ;;  %188 = vst.msk [vmem:[#allocation2 + $0x50] sm:$0xff] %vm180_vm0, %v155_v7  ;;  %v161_v13 = vld [vmem:[%s580_s13 + $0x68] sm:$0xff]  ;;  %v162_v14 = vld [vmem:[%s580_s13 + $0x70] sm:$0xff] }
  0x16   : > { %189 = vst.msk [vmem:[#allocation2 + $0x60] sm:$0xff] %vm180_vm0, %v156_v8  ;;  %190 = vst.msk [vmem:[#allocation2 + $0x68] sm:$0xff] %vm180_vm0, %v157_v9  ;;  %v163_v15 = vld [vmem:[%s580_s13 + $0x78] sm:$0xff]  ;;  %v164_v16 = vld [vmem:[%s580_s13 + $0x80] sm:$0xff] }
  0x17   : > { %191 = vst.msk [vmem:[#allocation2 + $0x78] sm:$0xff] %vm180_vm0, %v158_v10  ;;  %192 = vst.msk [vmem:[#allocation2 + $0x80] sm:$0xff] %vm180_vm0, %v159_v11  ;;  %v165_v17 = vld [vmem:[%s580_s13 + $0x88] sm:$0xff]  ;;  %v166_v18 = vld [vmem:[%s580_s13 + $0x90] sm:$0xff] }
  0x18   : > { %221 = vst.msk [vmem:[#allocation2 + $0x69] sm:$0x80] %vm216_vm1, %v157_v9  ;;  %222 = vst.msk [vmem:[#allocation2 + $0x81] sm:$0x80] %vm216_vm1, %v159_v11  ;;  %v167_v19 = vld [vmem:[%s580_s13 + $0x98] sm:$0xff]  ;;  %v168_v20 = vld [vmem:[%s580_s13 + $0xa0] sm:$0xff] }
  0x19   : > { %193 = vst.msk [vmem:[#allocation2 + $0x90] sm:$0xff] %vm180_vm0, %v160_v12  ;;  %194 = vst.msk [vmem:[#allocation2 + $0x98] sm:$0xff] %vm180_vm0, %v161_v13  ;;  %v169_v21 = vld [vmem:[%s580_s13 + $0xa8] sm:$0xff]  ;;  %v170_v22 = vld [vmem:[%s580_s13 + $0xb0] sm:$0xff] }
  0x1a   : > { %195 = vst.msk [vmem:[#allocation2 + $0xa8] sm:$0xff] %vm180_vm0, %v162_v14  ;;  %196 = vst.msk [vmem:[#allocation2 + $0xb0] sm:$0xff] %vm180_vm0, %v163_v15  ;;  %v171_v23 = vld [vmem:[%s580_s13 + $0xb8] sm:$0xff]  ;;  %v172_v24 = vld [vmem:[%s580_s13 + $0xc0] sm:$0xff] }
  0x1b   : > { %223 = vst.msk [vmem:[#allocation2 + $0x99] sm:$0x80] %vm216_vm1, %v161_v13  ;;  %224 = vst.msk [vmem:[#allocation2 + $0xb1] sm:$0x80] %vm216_vm1, %v163_v15  ;;  %v173_v25 = vld [vmem:[%s580_s13 + $0xc8] sm:$0xff]  ;;  %v174_v26 = vld [vmem:[%s580_s13 + $0xd0] sm:$0xff] }
  0x1c   : > { %197 = vst.msk [vmem:[#allocation2 + $0xc0] sm:$0xff] %vm180_vm0, %v164_v16  ;;  %198 = vst.msk [vmem:[#allocation2 + $0xc8] sm:$0xff] %vm180_vm0, %v165_v17  ;;  %v175_v27 = vld [vmem:[%s580_s13 + $0xd8] sm:$0xff]  ;;  %v176_v28 = vld [vmem:[%s580_s13 + $0xe0] sm:$0xff] }
  0x1d   : > { %225 = vst.msk [vmem:[#allocation2 + $0xc9] sm:$0x80] %vm216_vm1, %v165_v17  ;;  %226 = vst.msk [vmem:[#allocation2 + $0xe1] sm:$0x80] %vm216_vm1, %v167_v19  ;;  %v177_v29 = vld [vmem:[%s580_s13 + $0xe8] sm:$0xff]  ;;  %v178_v30 = vld [vmem:[%s580_s13 + $0xf0] sm:$0xff] }
  0x1e   : > { %199 = vst.msk [vmem:[#allocation2 + $0xd8] sm:$0xff] %vm180_vm0, %v166_v18  ;;  %200 = vst.msk [vmem:[#allocation2 + $0xe0] sm:$0xff] %vm180_vm0, %v167_v19  ;;  %v179_v31 = vld [vmem:[%s580_s13 + $0xf8] sm:$0xff]  ;;  %v234_v32 = vld [vmem:[#allocation2] sm:$0xff] }
  0x1f   : > { %201 = vst.msk [vmem:[#allocation2 + $0xf0] sm:$0xff] %vm180_vm0, %v168_v20  ;;  %202 = vst.msk [vmem:[#allocation2 + $0xf8] sm:$0xff] %vm180_vm0, %v169_v21  ;;  %v236_v33 = vld [vmem:[#allocation2 + $0x18] sm:$0xff]  ;;  %v268_v34 = vld [vmem:[#allocation2 + $0x1] sm:$0xff] }
  0x20   : > { %203 = vst.msk [vmem:[#allocation2 + $0x108] sm:$0xff] %vm180_vm0, %v170_v22  ;;  %204 = vst.msk [vmem:[#allocation2 + $0x110] sm:$0xff] %vm180_vm0, %v171_v23  ;;  %v270_v35 = vld [vmem:[#allocation2 + $0x19] sm:$0xff]  ;;  %v302_v36 = vmax.f32 %v234_v32, %v268_v34  ;;  %v235_v38 = vld [vmem:[#allocation2 + $0x8] sm:$0xff] }
  0x21   : > { %227 = vst.msk [vmem:[#allocation2 + $0xf9] sm:$0x80] %vm216_vm1, %v169_v21  ;;  %228 = vst.msk [vmem:[#allocation2 + $0x111] sm:$0x80] %vm216_vm1, %v171_v23  ;;  %v304_v37 = vmax.f32 %v236_v33, %v270_v35  ;;  %v237_v39 = vld [vmem:[#allocation2 + $0x20] sm:$0xff]  ;;  %v269_v40 = vld [vmem:[#allocation2 + $0x9] sm:$0xff] }
  0x22   : > { %205 = vst.msk [vmem:[#allocation2 + $0x120] sm:$0xff] %vm180_vm0, %v172_v24  ;;  %206 = vst.msk [vmem:[#allocation2 + $0x128] sm:$0xff] %vm180_vm0, %v173_v25  ;;  %v271_v41 = vld [vmem:[#allocation2 + $0x21] sm:$0xff]  ;;  %v303_v42 = vmax.f32 %v235_v38, %v269_v40  ;;  %v238_v43 = vld [vmem:[#allocation2 + $0x30] sm:$0xff] }
  0x23   : > { %207 = vst.msk [vmem:[#allocation2 + $0x138] sm:$0xff] %vm180_vm0, %v174_v26  ;;  %208 = vst.msk [vmem:[#allocation2 + $0x140] sm:$0xff] %vm180_vm0, %v175_v27  ;;  %v272_v44 = vld [vmem:[#allocation2 + $0x31] sm:$0xff]  ;;  %v336_v45 = vmax.f32 %v302_v36, %v304_v37  ;;  %v305_v46 = vmax.f32 %v237_v39, %v271_v41  ;;  %v273_v49 = vld [vmem:[#allocation2 + $0x39] sm:$0xff] }
  0x24   : > { %229 = vst.msk [vmem:[#allocation2 + $0x129] sm:$0x80] %vm216_vm1, %v173_v25  ;;  %230 = vst.msk [vmem:[#allocation2 + $0x141] sm:$0x80] %vm216_vm1, %v175_v27  ;;  %v306_v47 = vmax.f32 %v238_v43, %v272_v44  ;;  %v239_v48 = vld [vmem:[#allocation2 + $0x38] sm:$0xff]  ;;  %v240_v50 = vld [vmem:[#allocation2 + $0x48] sm:$0xff] }
  0x25   : > { %209 = vst.msk [vmem:[#allocation2 + $0x150] sm:$0xff] %vm180_vm0, %v176_v28  ;;  %210 = vst.msk [vmem:[#allocation2 + $0x158] sm:$0xff] %vm180_vm0, %v177_v29  ;;  %v307_v51 = vmax.f32 %v239_v48, %v273_v49  ;;  %v274_v52 = vld [vmem:[#allocation2 + $0x49] sm:$0xff]  ;;  %v275_v54 = vld [vmem:[#allocation2 + $0x51] sm:$0xff]  ;;  %v337_v55 = vmax.f32 %v303_v42, %v305_v46 }
  0x26   : > { %231 = vst.msk [vmem:[#allocation2 + $0x159] sm:$0x80] %vm216_vm1, %v177_v29  ;;  %232 = vst.msk [vmem:[#allocation2 + $0x171] sm:$0x80] %vm216_vm1, %v179_v31  ;;  %v241_v53 = vld [vmem:[#allocation2 + $0x50] sm:$0xff]  ;;  %v338_v56 = vmax.f32 %v304_v37, %v306_v47  ;;  %v308_v57 = vmax.f32 %v240_v50, %v274_v52  ;;  %v242_v59 = vld [vmem:[#allocation2 + $0x60] sm:$0xff] }
  0x27   : > { %211 = vst.msk [vmem:[#allocation2 + $0x168] sm:$0xff] %vm180_vm0, %v178_v30  ;;  %214 = vst.msk [vmem:[#allocation2 + $0x180] sm:$0xff] %vm180_vm0, %v178_v30  ;;  %v309_v58 = vmax.f32 %v241_v53, %v275_v54  ;;  %v276_v60 = vld [vmem:[#allocation2 + $0x61] sm:$0xff]  ;;  %v339_v62 = vmax.f32 %v305_v46, %v307_v51  ;;  %v277_v0 = vld [vmem:[#allocation2 + $0x69] sm:$0xff] }
  0x28   : > { %212 = vst.msk [vmem:[#allocation2 + $0x170] sm:$0xff] %vm180_vm0, %v179_v31  ;;  %215 = vst.msk [vmem:[#allocation2 + $0x188] sm:$0xff] %vm180_vm0, %v179_v31  ;;  %v243_v61 = vld [vmem:[#allocation2 + $0x68] sm:$0xff]  ;;  %v310_v63 = vmax.f32 %v242_v59, %v276_v60  ;;  %v244_v1 = vld [vmem:[#allocation2 + $0x78] sm:$0xff]  ;;  %v340_v3 = vmax.f32 %v306_v47, %v308_v57 }
  0x29   : > { %233 = vst.msk [vmem:[#allocation2 + $0x189] sm:$0x80] %vm216_vm1, %v179_v31  ;;  %v278_v2 = vld [vmem:[#allocation2 + $0x79] sm:$0xff]  ;;  %v341_v4 = vmax.f32 %v307_v51, %v309_v58  ;;  %v311_v5 = vmax.f32 %v243_v61, %v277_v0  ;;  %v279_v8 = vld [vmem:[#allocation2 + $0x81] sm:$0xff]  ;;  %v246_v9 = vld [vmem:[#allocation2 + $0x90] sm:$0xff] }
  0x2a   : > { %368 = vst.msk [vmem:[%s670_s16] sm:$0xff] %vm180_vm0, %v336_v45  ;;  %369 = vst.msk [vmem:[%s670_s16 + $0x8] sm:$0xff] %vm180_vm0, %v337_v55  ;;  %v312_v6 = vmax.f32 %v244_v1, %v278_v2  ;;  %v245_v7 = vld [vmem:[#allocation2 + $0x80] sm:$0xff]  ;;  %v342_v10 = vmax.f32 %v308_v57, %v310_v63  ;;  %v280_v12 = vld [vmem:[#allocation2 + $0x91] sm:$0xff] }
  0x2b   : > { %370 = vst.msk [vmem:[%s670_s16 + $0x10] sm:$0xff] %vm180_vm0, %v338_v56  ;;  %371 = vst.msk [vmem:[%s670_s16 + $0x18] sm:$0xff] %vm180_vm0, %v339_v62  ;;  %v313_v11 = vmax.f32 %v245_v7, %v279_v8  ;;  %v247_v13 = vld [vmem:[#allocation2 + $0x98] sm:$0xff]  ;;  %v343_v15 = vmax.f32 %v309_v58, %v311_v5  ;;  %v314_v17 = vmax.f32 %v246_v9, %v280_v12  ;;  %v248_v19 = vld [vmem:[#allocation2 + $0xa8] sm:$0xff] }
  0x2c   : > { %v281_v14 = vld [vmem:[#allocation2 + $0x99] sm:$0xff]  ;;  %372 = vst.msk [vmem:[%s670_s16 + $0x20] sm:$0xff] %vm180_vm0, %v340_v3  ;;  %373 = vst.msk [vmem:[%s670_s16 + $0x28] sm:$0xff] %vm180_vm0, %v341_v4  ;;  %v344_v16 = vmax.f32 %v310_v63, %v312_v6  ;;  %v282_v20 = vld [vmem:[#allocation2 + $0xa9] sm:$0xff] }
  0x2d   : > { %v315_v18 = vmax.f32 %v247_v13, %v281_v14  ;;  %v249_v21 = vld [vmem:[#allocation2 + $0xb0] sm:$0xff]  ;;  %374 = vst.msk [vmem:[%s670_s16 + $0x30] sm:$0xff] %vm180_vm0, %v342_v10  ;;  %v345_v22 = vmax.f32 %v311_v5, %v313_v11  ;;  %v316_v23 = vmax.f32 %v248_v19, %v282_v20  ;;  %v250_v25 = vld [vmem:[#allocation2 + $0xc0] sm:$0xff]  ;;  %375 = vst.msk [vmem:[%s670_s16 + $0x38] sm:$0xff] %vm180_vm0, %v343_v15 }
  0x2e   : > { %v283_v24 = vld [vmem:[#allocation2 + $0xb1] sm:$0xff]  ;;  %v284_v26 = vld [vmem:[#allocation2 + $0xc1] sm:$0xff]  ;;  %376 = vst.msk [vmem:[%s670_s16 + $0x40] sm:$0xff] %vm180_vm0, %v344_v16  ;;  %v346_v27 = vmax.f32 %v312_v6, %v314_v17  ;;  %v285_v32 = vld [vmem:[#allocation2 + $0xc9] sm:$0xff] }
  0x2f   : > { %v347_v28 = vmax.f32 %v313_v11, %v315_v18  ;;  %v317_v29 = vmax.f32 %v249_v21, %v283_v24  ;;  %v318_v30 = vmax.f32 %v250_v25, %v284_v26  ;;  %v251_v31 = vld [vmem:[#allocation2 + $0xc8] sm:$0xff]  ;;  %v252_v33 = vld [vmem:[#allocation2 + $0xd8] sm:$0xff]  ;;  %377 = vst.msk [vmem:[%s670_s16 + $0x48] sm:$0xff] %vm180_vm0, %v345_v22  ;;  %v348_v34 = vmax.f32 %v314_v17, %v316_v23  ;;  %v253_v37 = vld [vmem:[#allocation2 + $0xe0] sm:$0xff] }
  0x30   : > { %v319_v35 = vmax.f32 %v251_v31, %v285_v32  ;;  %v286_v36 = vld [vmem:[#allocation2 + $0xd9] sm:$0xff]  ;;  %v287_v38 = vld [vmem:[#allocation2 + $0xe1] sm:$0xff]  ;;  %378 = vst.msk [vmem:[%s670_s16 + $0x50] sm:$0xff] %vm180_vm0, %v346_v27  ;;  %v254_v43 = vld [vmem:[#allocation2 + $0xf0] sm:$0xff] }
  0x31   : > { %379 = vst.msk [vmem:[%s670_s16 + $0x58] sm:$0xff] %vm180_vm0, %v347_v28  ;;  %v349_v39 = vmax.f32 %v315_v18, %v317_v29  ;;  %v350_v40 = vmax.f32 %v316_v23, %v318_v30  ;;  %v320_v41 = vmax.f32 %v252_v33, %v286_v36  ;;  %v321_v42 = vmax.f32 %v253_v37, %v287_v38  ;;  %v288_v44 = vld [vmem:[#allocation2 + $0xf1] sm:$0xff]  ;;  %v289_v48 = vld [vmem:[#allocation2 + $0xf9] sm:$0xff]  ;;  %v256_v49 = vld [vmem:[#allocation2 + $0x108] sm:$0xff] }
  0x32   : > { %v255_v45 = vld [vmem:[#allocation2 + $0xf8] sm:$0xff]  ;;  %380 = vst.msk [vmem:[%s670_s16 + $0x60] sm:$0xff] %vm180_vm0, %v348_v34  ;;  %v351_v46 = vmax.f32 %v317_v29, %v319_v35  ;;  %v322_v47 = vmax.f32 %v254_v43, %v288_v44  ;;  %v290_v50 = vld [vmem:[#allocation2 + $0x109] sm:$0xff]  ;;  %v258_v57 = vld [vmem:[#allocation2 + $0x120] sm:$0xff] }
  0x33   : > { %381 = vst.msk [vmem:[%s670_s16 + $0x68] sm:$0xff] %vm180_vm0, %v349_v39  ;;  %382 = vst.msk [vmem:[%s670_s16 + $0x70] sm:$0xff] %vm180_vm0, %v350_v40  ;;  %v352_v51 = vmax.f32 %v318_v30, %v320_v41  ;;  %v353_v52 = vmax.f32 %v319_v35, %v321_v42  ;;  %v323_v53 = vmax.f32 %v255_v45, %v289_v48  ;;  %v257_v55 = vld [vmem:[#allocation2 + $0x110] sm:$0xff]  ;;  %v292_v60 = vld [vmem:[#allocation2 + $0x121] sm:$0xff] }
  0x34   : > { %v324_v54 = vmax.f32 %v256_v49, %v290_v50  ;;  %v291_v56 = vld [vmem:[#allocation2 + $0x111] sm:$0xff]  ;;  %383 = vst.msk [vmem:[%s670_s16 + $0x78] sm:$0xff] %vm180_vm0, %v351_v46  ;;  %v354_v58 = vmax.f32 %v320_v41, %v322_v47  ;;  %v259_v61 = vld [vmem:[#allocation2 + $0x128] sm:$0xff]  ;;  %v326_v1 = vmax.f32 %v258_v57, %v292_v60  ;;  %v294_v4 = vld [vmem:[#allocation2 + $0x139] sm:$0xff] }
  0x35   : > { %v325_v59 = vmax.f32 %v257_v55, %v291_v56  ;;  %v293_v62 = vld [vmem:[#allocation2 + $0x129] sm:$0xff]  ;;  %384 = vst.msk [vmem:[%s670_s16 + $0x80] sm:$0xff] %vm180_vm0, %v352_v51  ;;  %385 = vst.msk [vmem:[%s670_s16 + $0x88] sm:$0xff] %vm180_vm0, %v353_v52  ;;  %v355_v63 = vmax.f32 %v321_v42, %v323_v53  ;;  %v260_v3 = vld [vmem:[#allocation2 + $0x138] sm:$0xff] }
  0x36   : > { %v356_v0 = vmax.f32 %v322_v47, %v324_v54  ;;  %v327_v2 = vmax.f32 %v259_v61, %v293_v62  ;;  %v261_v5 = vld [vmem:[#allocation2 + $0x140] sm:$0xff]  ;;  %386 = vst.msk [vmem:[%s670_s16 + $0x90] sm:$0xff] %vm180_vm0, %v354_v58  ;;  %v328_v7 = vmax.f32 %v260_v3, %v294_v4  ;;  %v262_v9 = vld [vmem:[#allocation2 + $0x150] sm:$0xff]  ;;  %v358_v11 = vmax.f32 %v324_v54, %v326_v1  ;;  %v263_v15 = vld [vmem:[#allocation2 + $0x158] sm:$0xff] }
  0x37   : > { %v357_v6 = vmax.f32 %v323_v53, %v325_v59  ;;  %v295_v8 = vld [vmem:[#allocation2 + $0x141] sm:$0xff]  ;;  %v296_v10 = vld [vmem:[#allocation2 + $0x151] sm:$0xff]  ;;  %387 = vst.msk [vmem:[%s670_s16 + $0x98] sm:$0xff] %vm180_vm0, %v355_v63  ;;  %v297_v16 = vld [vmem:[#allocation2 + $0x159] sm:$0xff] }
  0x38   : > { %388 = vst.msk [vmem:[%s670_s16 + $0xa0] sm:$0xff] %vm180_vm0, %v356_v0  ;;  %v359_v12 = vmax.f32 %v325_v59, %v327_v2  ;;  %v329_v13 = vmax.f32 %v261_v5, %v295_v8  ;;  %v330_v14 = vmax.f32 %v262_v9, %v296_v10  ;;  %v264_v17 = vld [vmem:[#allocation2 + $0x168] sm:$0xff]  ;;  %v360_v18 = vmax.f32 %v326_v1, %v328_v7  ;;  %v265_v21 = vld [vmem:[#allocation2 + $0x170] sm:$0xff]  ;;  %v266_v27 = vld [vmem:[#allocation2 + $0x180] sm:$0xff] }
  0x39   : > { %389 = vst.msk [vmem:[%s670_s16 + $0xa8] sm:$0xff] %vm180_vm0, %v357_v6  ;;  %v331_v19 = vmax.f32 %v263_v15, %v297_v16  ;;  %v298_v20 = vld [vmem:[#allocation2 + $0x169] sm:$0xff]  ;;  %v299_v22 = vld [vmem:[#allocation2 + $0x171] sm:$0xff]  ;;  %390 = vst.msk [vmem:[%s670_s16 + $0xb0] sm:$0xff] %vm180_vm0, %v358_v11 }
  0x3a   : > { %391 = vst.msk [vmem:[%s670_s16 + $0xb8] sm:$0xff] %vm180_vm0, %v359_v12  ;;  %v361_v23 = vmax.f32 %v327_v2, %v329_v13  ;;  %v362_v24 = vmax.f32 %v328_v7, %v330_v14  ;;  %v332_v25 = vmax.f32 %v264_v17, %v298_v20  ;;  %v333_v26 = vmax.f32 %v265_v21, %v299_v22  ;;  %v300_v28 = vld [vmem:[#allocation2 + $0x181] sm:$0xff]  ;;  %v301_v32 = vld [vmem:[#allocation2 + $0x189] sm:$0xff] }
  0x3b   : > { %v267_v29 = vld [vmem:[#allocation2 + $0x188] sm:$0xff]  ;;  %392 = vst.msk [vmem:[%s670_s16 + $0xc0] sm:$0xff] %vm180_vm0, %v360_v18  ;;  %v363_v30 = vmax.f32 %v329_v13, %v331_v19  ;;  %v334_v31 = vmax.f32 %v266_v27, %v300_v28 }
  0x3c   : > { %393 = vst.msk [vmem:[%s670_s16 + $0xc8] sm:$0xff] %vm180_vm0, %v361_v23  ;;  %394 = vst.msk [vmem:[%s670_s16 + $0xd0] sm:$0xff] %vm180_vm0, %v362_v24  ;;  %v364_v33 = vmax.f32 %v330_v14, %v332_v25  ;;  %v365_v34 = vmax.f32 %v331_v19, %v333_v26  ;;  %v335_v35 = vmax.f32 %v267_v29, %v301_v32 }
  0x3d   : > { %395 = vst.msk [vmem:[%s670_s16 + $0xd8] sm:$0xff] %vm180_vm0, %v363_v30  ;;  %v366_v36 = vmax.f32 %v332_v25, %v334_v31 }
  0x3e   : > { %396 = vst.msk [vmem:[%s670_s16 + $0xe0] sm:$0xff] %vm180_vm0, %v364_v33  ;;  %397 = vst.msk [vmem:[%s670_s16 + $0xe8] sm:$0xff] %vm180_vm0, %v365_v34  ;;  %v367_v37 = vmax.f32 %v333_v26, %v335_v35 }
  0x3f   : > { %398 = vst.msk [vmem:[%s670_s16 + $0xf0] sm:$0xff] %vm180_vm0, %v366_v36 }
  0x40   : > { %399 = vst.msk [vmem:[%s670_s16 + $0xf8] sm:$0xff] %vm180_vm0, %v367_v37 }
  0x41 PF: > { %s11_s8 = sadd.s32 1, %s542_s8   ;;  %s747_s6 = smov %s538_s7 }
  0x42   : > { %p8_p5 = scmp.ge.s32.totalorder %s11_s8, 4   ;;  %s748_s7 = smov %s750_s9 }
  0x44   :  { %10 = sbr.rel (!%p8_p5) target bundleno = 2 (0x2), region = 55 }

</bundles_post_ra>
